<compile_context>
chip_gen: v7x
topology: tpu7x:2x2x1
jax: 0.10.0
libtpu: 0.0.40
codegen_flags: <defaults>
</compile_context>

<pallas_src>
import functools

import jax
import jax.numpy as jnp
from jax import lax
from jax.experimental import pallas as pl
from jax.experimental.pallas import tpu as pltpu

LANE = 128
_SUBLANES = 8
_NCORES = 2            # leading "parallel" grid axis (uses both TCs on v7x)
_MAX_TILE_ROWS = 1024  # (1024,128) f32 block = 512 KiB -> fits all generations


# ---------------------------------------------------------------------------
# Kernel 1: binary_cross_entropy_with_logits, reduction='mean'
#   outputs per-(core) (8,128) partial sums; mean taken in the wrapper.
# ---------------------------------------------------------------------------
def _bce_kernel(n_ref, yp_ref, yt_ref, acc_ref, *, tiles_per_core):
    c = pl.program_id(0)
    i = pl.program_id(1)

    @pl.when(i == 0)
    def _():
        acc_ref[...] = jnp.zeros_like(acc_ref)

    tile_r = yp_ref.shape[0]
    n = n_ref[0]
    t = c * tiles_per_core + i          # logical tile index (may be clamped in index_map)

    row = lax.broadcasted_iota(jnp.int32, (tile_r, LANE), 0)
    col = lax.broadcasted_iota(jnp.int32, (tile_r, LANE), 1)
    valid = ((t * tile_r + row) * LANE + col) < n

    # Sanitize padded / OOB lanes before any math so garbage never propagates.
    x = jnp.where(valid, yp_ref[...], 0.0)
    y = jnp.where(valid, yt_ref[...], 0.0)

    # Numerically stable BCE-with-logits (matches torch):
    #   max(x,0) - x*y + log1p(exp(-|x|))
    per = jnp.maximum(x, 0.0) - x * y + jnp.log1p(jnp.exp(-jnp.abs(x)))
    per = jnp.where(valid, per, 0.0)

    # (TILE_R,128) -> (8,128) partial sums: pure VALU adds (no per-tile XLU).
    part = jnp.sum(per.reshape(tile_r // _SUBLANES, _SUBLANES, LANE), axis=0)
    acc_ref[...] += part[None]


# ---------------------------------------------------------------------------
# Kernel 2: AUC surrogate — one fused pass produces 4 sums + 4 nonzero counts
#   (torch.count_nonzero semantics).  Final divisions / alpha combine happen
#   in the wrapper.
# ---------------------------------------------------------------------------
def _auc_kernel(n_ref, ab_ref, yp_ref, yt_ref, acc_ref, *, tiles_per_core):
    c = pl.program_id(0)
    i = pl.program_id(1)

    @pl.when(i == 0)
    def _():
        acc_ref[...] = jnp.zeros_like(acc_ref)

    tile_r = yp_ref.shape[0]
    n = n_ref[0]
    a = ab_ref[0]
    b = ab_ref[1]
    t = c * tiles_per_core + i

    row = lax.broadcasted_iota(jnp.int32, (tile_r, LANE), 0)
    col = lax.broadcasted_iota(jnp.int32, (tile_r, LANE), 1)
    valid = ((t * tile_r + row) * LANE + col) < n

    x = jnp.where(valid, yp_ref[...], 0.0)
    y = jnp.where(valid, yt_ref[...], -1.0)   # -1 -> neither positive nor negative

    p = jax.nn.sigmoid(x)                     # stable sigmoid (EUP)
    pos = jnp.where(y == 1.0, 1.0, 0.0)
    neg = jnp.where(y == 0.0, 1.0, 0.0)

    t0 = (p - a) ** 2 * pos                   # -> mean with a
    t1 = (p - b) ** 2 * neg                   # -> mean with b
    t2 = p * neg
    t3 = p * pos

    terms = (
        t0, t1, t2, t3,
        jnp.where(t0 != 0.0, 1.0, 0.0),       # count_nonzero streams
        jnp.where(t1 != 0.0, 1.0, 0.0),
        jnp.where(t2 != 0.0, 1.0, 0.0),
        jnp.where(t3 != 0.0, 1.0, 0.0),
    )
    folds = [jnp.sum(v.reshape(tile_r // _SUBLANES, _SUBLANES, LANE), axis=0)
             for v in terms]
    acc_ref[...] += jnp.concatenate(folds, axis=0)[None]   # (1, 64, 128)


# ---------------------------------------------------------------------------
# pallas_call wrappers
# ---------------------------------------------------------------------------
def _grid_setup(rows):
    tile_r = min(_MAX_TILE_ROWS, rows)
    num_tiles = -(-rows // tile_r)
    tiles_per_core = -(-num_tiles // _NCORES)

    def data_map(c, i, *_):
        # Clamp out-of-range steps to the last real tile; their contribution is
        # zeroed in-kernel by the iota-vs-N mask, so re-reading is harmless.
        return (jnp.minimum(c * tiles_per_core + i, num_tiles - 1), 0)

    return tile_r, tiles_per_core, (_NCORES, tiles_per_core), data_map


@jax.jit
def _bce_forward(yp2d, yt2d, n_arr):
    rows, lanes = yp2d.shape
    assert lanes == LANE and rows % _SUBLANES == 0
    tile_r, tpc, grid, data_map = _grid_setup(rows)

    partials = pl.pallas_call(
        functools.partial(_bce_kernel, tiles_per_core=tpc),
        out_shape=jax.ShapeDtypeStruct((_NCORES, _SUBLANES, LANE), jnp.float32),
        grid_spec=pltpu.PrefetchScalarGridSpec(
            num_scalar_prefetch=1,
            grid=grid,
            in_specs=[pl.BlockSpec((tile_r, LANE), data_map),
                      pl.BlockSpec((tile_r, LANE), data_map)],
            out_specs=pl.BlockSpec((1, _SUBLANES, LANE), lambda c, i, *_: (c, 0, 0)),
        ),
        compiler_params=pltpu.CompilerParams(
            dimension_semantics=("parallel", "arbitrary")),
    )(n_arr, yp2d, yt2d)

    return jnp.sum(partials) / n_arr[0].astype(jnp.float32)


@jax.jit
def _auc_forward(yp2d, yt2d, n_arr, ab, alpha, margin):
    rows, lanes = yp2d.shape
    assert lanes == LANE and rows % _SUBLANES == 0
    tile_r, tpc, grid, data_map = _grid_setup(rows)

    partials = pl.pallas_call(
        functools.partial(_auc_kernel, tiles_per_core=tpc),
        out_shape=jax.ShapeDtypeStruct((_NCORES, 8 * _SUBLANES, LANE), jnp.float32),
        grid_spec=pltpu.PrefetchScalarGridSpec(
            num_scalar_prefetch=2,
            grid=grid,
            in_specs=[pl.BlockSpec((tile_r, LANE), data_map),
                      pl.BlockSpec((tile_r, LANE), data_map)],
            out_specs=pl.BlockSpec((1, 8 * _SUBLANES, LANE),
                                   lambda c, i, *_: (c, 0, 0)),
        ),
        compiler_params=pltpu.CompilerParams(
            dimension_semantics=("parallel", "arbitrary")),
    )(n_arr, ab, yp2d, yt2d)

    # Single cross-lane/core reduction + all divisions in plain JAX.
    s = jnp.sum(partials.reshape(_NCORES, 8, _SUBLANES, LANE), axis=(0, 2, 3))
    alpha0 = alpha[0]
    loss = (s[0] / s[4] + s[1] / s[5]
            + 2.0 * alpha0 * (margin + s[2] / s[6] - s[3] / s[7])
            - alpha0 * alpha0)
    return loss


# ---------------------------------------------------------------------------
# Module-equivalent stateful wrapper
# ---------------------------------------------------------------------------
def _prep(arr):
    """Flatten, cast to f32, pad ragged tail to a (rows%8==0, 128) view."""
    flat = jnp.reshape(arr, (-1,)).astype(jnp.float32)   # _check_tensor_shape((-1, 1))
    n = flat.shape[0]
    unit = _SUBLANES * LANE
    n_pad = -(-n // unit) * unit
    if n_pad != n:
        flat = jnp.pad(flat, (0, n_pad - n))             # only the ragged tail
    return flat.reshape(n_pad // LANE, LANE), n


class CompositionalAUCLossV2:
    def __init__(self, margin=1.0):
        self.margin = float(margin)
        # Deterministic parameter init (matches torch.zeros(1) in __init__).
        self.a = jnp.zeros((1,), jnp.float32)
        self.b = jnp.zeros((1,), jnp.float32)
        self.alpha = jnp.zeros((1,), jnp.float32)
        # TODO(synk): alternating Python-side backend state mirrors the torch
        # module but is not trace-safe if this __call__ is itself jitted.
        self.backend = "ce"

    def __call__(self, y_pred, y_true):
        yp2d, n = _prep(y_pred)
        yt2d, _ = _prep(y_true)
        n_arr = jnp.asarray([n], jnp.int32)
        if self.backend == "ce":
            self.backend = "auc"
            return _bce_forward(yp2d, yt2d, n_arr)
        else:
            self.backend = "ce"
            ab = jnp.concatenate([self.a, self.b]).astype(jnp.float32)
            return _auc_forward(yp2d, yt2d, n_arr, ab, self.alpha, self.margin)


# ---------------------------------------------------------------------------
# Pure-JAX references for sanity checking
# ---------------------------------------------------------------------------
def _ref_bce(yp, yt):
    x = yp.reshape(-1).astype(jnp.float32)
    y = yt.reshape(-1).astype(jnp.float32)
    per = jnp.maximum(x, 0.0) - x * y + jnp.log1p(jnp.exp(-jnp.abs(x)))
    return jnp.mean(per)


def _ref_auc(yp, yt, a, b, alpha, margin):
    p = jax.nn.sigmoid(yp.reshape(-1).astype(jnp.float32))
    y = yt.reshape(-1).astype(jnp.float32)
    pos = (y == 1.0).astype(jnp.float32)
    neg = (y == 0.0).astype(jnp.float32)

    def nz_mean(t):
        return jnp.sum(t) / jnp.sum((t != 0.0).astype(jnp.float32))

    return (nz_mean((p - a) ** 2 * pos) + nz_mean((p - b) ** 2 * neg)
            + 2.0 * alpha * (margin + nz_mean(p * neg) - nz_mean(p * pos))
            - alpha ** 2)


if __name__ == "__main__":
    key = jax.random.PRNGKey(0)

    for N in (256, 300):   # 300 exercises the in-kernel ragged-tail mask
        k1, k2, key = jax.random.split(key, 3)
        y_pred = jax.random.normal(k1, (N, 1), dtype=jnp.float32)
        y_true = jax.random.bernoulli(k2, 0.5, (N, 1)).astype(jnp.float32)

        loss_fn = CompositionalAUCLossV2(margin=1.0)

        # First call -> CE branch
        loss_ce = loss_fn(y_pred, y_true)
        jax.block_until_ready(loss_ce)
        ref_ce = _ref_bce(y_pred, y_true)
        assert jnp.allclose(loss_ce, ref_ce, atol=1e-5, rtol=1e-5), (N, loss_ce, ref_ce)

        # Second call -> AUC branch
        loss_auc = loss_fn(y_pred, y_true)
        jax.block_until_ready(loss_auc)
        ref_auc = _ref_auc(y_pred, y_true, 0.0, 0.0, 0.0, 1.0)
        assert jnp.allclose(loss_auc, ref_auc, atol=1e-5, rtol=1e-5), (N, loss_auc, ref_auc)

    print("KERNEL_OK")
</pallas_src>

<mosaic_0001>
module attributes {stable_mosaic.version = 11 : i64} {
  func.func @_bce_kernel(%arg0: i32, %arg1: i32, %arg2: memref<1xi32, #tpu.memory_space<smem>>, %arg3: memref<8x128xf32, #tpu.memory_space<vmem>>, %arg4: memref<8x128xf32, #tpu.memory_space<vmem>>, %arg5: memref<1x8x128xf32, #tpu.memory_space<vmem>>) attributes {dimension_semantics = [#tpu.dimension_semantics<parallel>, #tpu.dimension_semantics<arbitrary>], iteration_bounds = array<i64: 2, 1>, scalar_prefetch = 1 : i64, scratch_operands = 0 : i64, tpu.core_type = #tpu.core_type<tc>, window_params = [{transform_indices = @transform_0, window_bounds = array<i64: 8, 128>}, {transform_indices = @transform_1, window_bounds = array<i64: 8, 128>}, {transform_indices = @transform_2, window_bounds = array<i64: 1, 8, 128>}]} {
    %c0_i32 = arith.constant 0 : i32
    %0 = arith.cmpi eq, %arg1, %c0_i32 : i32
    %1 = arith.extui %0 : i1 to i32
    %c0_i32_0 = arith.constant 0 : i32
    %2 = arith.cmpi ne, %1, %c0_i32_0 : i32
    scf.if %2 {
      %cst_16 = arith.constant 0.000000e+00 : f32
      %40 = vector.broadcast %cst_16 : f32 to vector<1x8x128xf32>
      %c0_17 = arith.constant 0 : index
      %c0_18 = arith.constant 0 : index
      %c0_19 = arith.constant 0 : index
      %41 = vector.load %arg5[%c0_17, %c0_18, %c0_19] : memref<1x8x128xf32, #tpu.memory_space<vmem>>, vector<1x8x128xf32>
      tpu.vector_store %arg5[%c0_17, %c0_18, %c0_19], %40 {strides = array<i32>} : memref<1x8x128xf32, #tpu.memory_space<vmem>>, vector<1x8x128xf32>,
    } else {
    }
    %c0 = arith.constant 0 : index
    %3 = memref.load %arg2[%c0] : memref<1xi32, #tpu.memory_space<smem>>
    %c1_i32 = arith.constant 1 : i32
    %4 = arith.muli %arg0, %c1_i32 : i32
    %5 = arith.addi %4, %arg1 : i32
    %6 = tpu.iota {dimensions = array<i32: 0>} : vector<8x128xi32>
    %7 = tpu.iota {dimensions = array<i32: 1>} : vector<8x128xi32>
    %c8_i32 = arith.constant 8 : i32
    %8 = arith.muli %5, %c8_i32 : i32
    %9 = vector.broadcast %8 : i32 to vector<8x128xi32>
    %10 = arith.addi %9, %6 : vector<8x128xi32>
    %c128_i32 = arith.constant 128 : i32
    %11 = vector.broadcast %c128_i32 : i32 to vector<8x128xi32>
    %12 = arith.muli %10, %11 : vector<8x128xi32>
    %13 = arith.addi %12, %7 : vector<8x128xi32>
    %14 = vector.broadcast %3 : i32 to vector<8x128xi32>
    %15 = arith.cmpi slt, %13, %14 : vector<8x128xi32>
    %c0_1 = arith.constant 0 : index
    %c0_2 = arith.constant 0 : index
    %16 = vector.load %arg3[%c0_1, %c0_2] : memref<8x128xf32, #tpu.memory_space<vmem>>, vector<8x128xf32>
    %cst = arith.constant 0.000000e+00 : f32
    %17 = vector.broadcast %cst : f32 to vector<8x128xf32>
    %18 = arith.select %15, %16, %17 : vector<8x128xi1>, vector<8x128xf32>
    %c0_3 = arith.constant 0 : index
    %c0_4 = arith.constant 0 : index
    %19 = vector.load %arg4[%c0_3, %c0_4] : memref<8x128xf32, #tpu.memory_space<vmem>>, vector<8x128xf32>
    %cst_5 = arith.constant 0.000000e+00 : f32
    %20 = vector.broadcast %cst_5 : f32 to vector<8x128xf32>
    %21 = arith.select %15, %19, %20 : vector<8x128xi1>, vector<8x128xf32>
    %cst_6 = arith.constant 0.000000e+00 : f32
    %22 = vector.broadcast %cst_6 : f32 to vector<8x128xf32>
    %23 = arith.maximumf %18, %22 : vector<8x128xf32>
    %24 = arith.mulf %18, %21 : vector<8x128xf32>
    %25 = arith.subf %23, %24 : vector<8x128xf32>
    %26 = math.absf %18 : vector<8x128xf32>
    %cst_7 = arith.constant 0.000000e+00 : f32
    %27 = vector.broadcast %cst_7 : f32 to vector<8x128xf32>
    %28 = arith.subf %27, %26 : vector<8x128xf32>
    %29 = math.exp %28 : vector<8x128xf32>
    %30 = math.log1p %29 : vector<8x128xf32>
    %31 = arith.addf %25, %30 : vector<8x128xf32>
    %cst_8 = arith.constant 0.000000e+00 : f32
    %32 = vector.broadcast %cst_8 : f32 to vector<8x128xf32>
    %33 = arith.select %15, %31, %32 : vector<8x128xi1>, vector<8x128xf32>
    %34 = vector.shape_cast %33 : vector<8x128xf32> to vector<1x8x128xf32>
    %cst_9 = arith.constant dense<0.000000e+00> : vector<8x128xf32>
    %35 = vector.multi_reduction <add>, %34, %cst_9 [0] : vector<1x8x128xf32> to vector<8x128xf32>
    %c0_10 = arith.constant 0 : index
    %c0_11 = arith.constant 0 : index
    %c0_12 = arith.constant 0 : index
    %36 = vector.load %arg5[%c0_10, %c0_11, %c0_12] : memref<1x8x128xf32, #tpu.memory_space<vmem>>, vector<1x8x128xf32>
    %37 = vector.shape_cast %35 : vector<8x128xf32> to vector<1x8x128xf32>
    %38 = arith.addf %36, %37 : vector<1x8x128xf32>
    %c0_13 = arith.constant 0 : index
    %c0_14 = arith.constant 0 : index
    %c0_15 = arith.constant 0 : index
    %39 = vector.load %arg5[%c0_13, %c0_14, %c0_15] : memref<1x8x128xf32, #tpu.memory_space<vmem>>, vector<1x8x128xf32>
    tpu.vector_store %arg5[%c0_13, %c0_14, %c0_15], %38 {strides = array<i32>} : memref<1x8x128xf32, #tpu.memory_space<vmem>>, vector<1x8x128xf32>,
    return
  }
  func.func @transform_0(%arg0: i32, %arg1: i32, %arg2: memref<1xi32, #tpu.memory_space<smem>>) -> (i32, i32) {
    %c1_i32 = arith.constant 1 : i32
    %0 = arith.muli %arg0, %c1_i32 : i32
    %1 = arith.addi %0, %arg1 : i32
    %c0_i32 = arith.constant 0 : i32
    %2 = arith.minsi %1, %c0_i32 : i32
    %c0_i32_0 = arith.constant 0 : i32
    %c0_i32_1 = arith.constant 0 : i32
    return %2, %c0_i32_0 : i32, i32
  }
  func.func @transform_1(%arg0: i32, %arg1: i32, %arg2: memref<1xi32, #tpu.memory_space<smem>>) -> (i32, i32) {
    %c1_i32 = arith.constant 1 : i32
    %0 = arith.muli %arg0, %c1_i32 : i32
    %1 = arith.addi %0, %arg1 : i32
    %c0_i32 = arith.constant 0 : i32
    %2 = arith.minsi %1, %c0_i32 : i32
    %c0_i32_0 = arith.constant 0 : i32
    %c0_i32_1 = arith.constant 0 : i32
    return %2, %c0_i32_0 : i32, i32
  }
  func.func @transform_2(%arg0: i32, %arg1: i32, %arg2: memref<1xi32, #tpu.memory_space<smem>>) -> (i32, i32, i32) {
    %c0_i32 = arith.constant 0 : i32
    %c0_i32_0 = arith.constant 0 : i32
    %c0_i32_1 = arith.constant 0 : i32
    return %arg0, %c0_i32, %c0_i32_0 : i32, i32, i32
  }
}

</mosaic_0001>

<bundles_post_ra>
// kernel: _bce_forward.1
= control target key start
LH: loop header
LB: loop body
LE: loop exit
PB: predicated region body
PF: predicated region fallthrough
CT: control target
= control target key end

     0   :  { %s635_s0 = inlined_call_operand.<no memory space> [shape: s32[1], index: 0, kind: input, shape index: {}]   ;;  %s636_s1 = inlined_call_operand.vmem [shape: f32[8,128], index: 1, kind: input, shape index: {}]   ;;  %s637_s2 = inlined_call_operand.hbm [shape: f32[8,128], index: 2, kind: input, shape index: {}]   ;;  %s638_s3 = inlined_call_operand.vmem [shape: f32[2,8,128], index: 3, kind: output, shape index: {}]  }
   0x1   :  { %8 = sst [smem:[#allocation3]] %s635_s0 }
   0x2   :  { %9 = vsyncpa [#allocation5], 0 }
   0x3   :  { %11 = vsyncpa [#allocation5 + $0x1], 0  ;;  %s531_s14 = smov 0   ;;  %s533_s15 = smov 0  }
   0x4   :  { %s535_s16 = smov 0   ;;  %s537_s17 = smov 0  }
   0x5   :  { %s539_s18 = smov 0  }
   0x6 LB: > { %s352_s0 = sadd.s32 4294967295, %s505_s18   ;;  %s29_s19 = sadd.s32 1, %s501_s17  ;;  %s505_s18 = sphi %s539_s18, %s17_s18   ;;  %s501_s17 = sphi %s537_s17, %s651_s17   ;;  %s497_s16 = sphi %s535_s16, %s650_s16   ;;  %s493_s15 = sphi %s533_s15, %s625_s15   ;;  %s489_s14 = sphi %s531_s14, %s649_s14  }
   0x7   : > { %p31_p0 = scmp.ge.s32.totalorder %s29_s19, 2  ;;  %p486_p1 = scmp.ne.s32.totalorder %s493_s15, 0 }
   0x8   : > { %p82_p2 = scmp.eq.s32.totalorder %s505_s18, 0  ;;  %p87_p3 = scmp.ne.s32.totalorder %s493_s15, %s489_s14 }
   0x9   : > { %s653_s19 = smov (%p31_p0, %s29_s19), 0  ;;  %p88_p4 = scmp.eq.s32.totalorder %s352_s0, 0 }
   0xa   : > { %p83_p5 = por %p486_p1, %p82_p2  ;;  %p374_p7 = scmp.lt.s32.totalorder %s505_s18, 2 }
   0xb   : > { %p561_p6 = por %p88_p4, %p87_p3  ;;  %s507_s21 = smov [#allocation4]  }
   0xc   : > { %s164_s22 = sshll.u32 %s507_s21, 4  ;;  %p566_p8 = pnand %p374_p7, %p83_p5  ;;  %s165_s22 = int_to_ptr.vmem [resolvable:$true] %s164_s22 }
   0xd   : > { %s641_s20 = scalar_select %p561_p6, 1, 0 }
   0xe   : > { %s642_s23 = scalar_select %p566_p8, 1, 0 }
   0xf   : > { %s428_s26 = scalar_lea.hbm %s637_s2, 128  ;;  %p430_p12 = pneg %p566_p8 }
  0x10   : > { %p429_p11 = scmp.ne.s32.totalorder %s637_s2, %s428_s26  ;;  %p435_p1 = scmp.lt.u32.totalorder %s428_s26, %s428_s26 }
  0x11   : > { %p437_p2 = scmp.lt.u32.totalorder %s428_s26, %s637_s2 }
  0x12   : > { %p431_p13 = pnand %p430_p12, %p429_p11 }
  0x13   : > { %p438_p3 = por %p437_p2, %p435_p1 }
  0x14   : > { %p432_p0 = pneg %p431_p13 }
  0x16   : > { %p439_p4 = pnand %p438_p3, %p432_p0 }
  0x18   : > { %442 = shalt.err (!%p439_p4)
}
  0x19   : > { %s443_s4 = scalar_lea.vmem %s165_s22, 128  ;;  %s450_s5 = scalar_lea.vmem %s165_s22, 256 }
  0x1a   : > { %p444_p5 = scmp.ne.s32.totalorder %s165_s22, %s443_s4  ;;  %p451_p10 = scmp.lt.s32.totalorder %s165_s22, %s165_s22 }
  0x1b   : > { %p452_p6 = scmp.lt.s32.totalorder %s450_s5, %s443_s4 }
  0x1c   : > { %p446_p7 = pnand %p444_p5, %p430_p12 }
  0x1d   : > { %p453_p8 = por %p452_p6, %p451_p10 }
  0x1e   : > { %p447_p9 = pneg %p446_p7 }
  0x20   : > { %p454_p11 = pnand %p453_p8, %p447_p9 }
  0x22   : > { %457 = shalt.err (!%p454_p11)
}
  0x23   : > { %p643_p13 = scmp.ne.s32.totalorder %s642_s23, 0  ;;  %p644_p0 = scmp.lt.s32.totalorder %s505_s18, 3 }
  0x24   : > { %p645_p1 = scmp.ge.s32.totalorder %s505_s18, 1 }
  0x25   : > { %373 = dma.hbm_to_vmem [thread:$0]  (!%p643_p13), %s637_s2, 128, %s165_s22, [#allocation5]  }
  0x26   : > { %p170_p2 = pnand %p645_p1, %p644_p0 }
  0x27   : > { %s175_s8 = sand.u32 (!%p170_p2), 1, %s493_s15   ;;  %p646_p6 = scmp.ne.s32.totalorder (!%p170_p2), %s641_s20, 0 }
  0x28   : > { %173 = sbr.rel (%p170_p2) target bundleno = 97 (0x61), region = 28  ;;  %s593_s9 = sshll.u32 (!%p170_p2), %s175_s8, 3 }
  0x29   : > { %s176_s10 = scalar_lea.sflag (!%p170_p2), [#allocation5], %s175_s8  ;;  %s179_s11 = scalar_lea.vmem (!%p170_p2), [#allocation4], %s593_s9 }
  0x2f   : > { %483 = dma.done.wait (%p646_p6), %s176_s10, 128  }
  0x30   : > { %485 = vsyncadd (%p646_p6), %s176_s10, 4294967168  ;;  %p207_p8 = scmp.lt.s32.totalorder %s497_s16, 0  ;;  %v230_v0 = vlaneseq  ;;  %s228_s12 = sld [smem:[#allocation3]]  ;;  %v243_v16 = vld [vmem:[%s179_s11] sm:$0xff] }
  0x31   : > { %s365_s13 = sshll.u32 %s497_s16, 3  ;;  %p219_p9 = scmp.lt.s32.totalorder %s497_s16, 1 }
  0x32   : > { %s208_s14 = scalar_select %p207_p8, %s497_s16, 0  ;;  %v231_v1 = vshrl.u32 %v230_v0, 7  ;;  %v235_v2 = vstv %s365_s13  ;;  %v233_v3 = vand.u32 127, %v230_v0 }
  0x33   : > { %s657_s16 = smov (!%p219_p9, %s497_s16), 1 }
  0x34   : > { %s655_s14 = smov (!%p207_p8, %s208_s14), 0  ;;  %v236_v4 = vadd.s32 %v235_v2, %v231_v1  ;;  %s364_s23 = sshll.u32 %s657_s16, 3 }
  0x35   : > { %s363_s0 = sshll.u32 %s655_s14, 3  ;;  %s222_s26 = scalar_lea.vmem %s638_s3, %s364_s23 }
  0x36   : > { %v237_v5 = vmul.u32 128, %v236_v4  ;;  %s212_s20 = scalar_lea.vmem %s636_s1, %s363_s0  ;;  %v239_v6 = vstv %s228_s12 }
  0x37   : > { %v241_v8 = vld [vmem:[%s212_s20] sm:$0xff] }
  0x38   : > { %v238_v7 = vadd.s32 %v237_v5, %v233_v3 }
  0x3a   : > { %vm606_vm0 = vcmp.lt.s32.totalorder %v238_v7, %v239_v6 }
  0x3b   : > { %v242_v10 = vsel %vm606_vm0, %v241_v8, 0.0  ;;  %v244_v18 = vsel %vm606_vm0, %v243_v16, 0.0 }
  0x3c   : > { %v248_v11 = vand.u32 2147483647, %v242_v10  ;;  %v245_v20 = vmax.f32 %v242_v10, 0.0  ;;  %v246_v21 = vmul.f32 %v244_v18, %v242_v10 }
  0x3e   : > { %v249_v12 = vsub.f32 0.0, %v248_v11  ;;  %v247_v25 = vsub.f32 %v245_v20, %v246_v21 }
  0x40   : > { %v250_v13 = vmul.f32 1.442695, %v249_v12 }
  0x42   : > { %424 = vpow2.f32 %v250_v13 }
  0x4c   : > { %v425_v14 = vpop.eup %424 }
  0x4d   : > { %v252_v15 = vadd.f32 1.0, %v425_v14  ;;  %v255_v17 = vmul.f32 -0.5, %v425_v14  ;;  %v258_v22 = vand.u32 2147483647, %v425_v14 }
  0x4f   : > { %426 = vlog2.f32 %v252_v15  ;;  %v256_v19 = vadd.f32 1.0, %v255_v17  ;;  %vm259_vm1 = vcmp.lt.f32.partialorder %v258_v22, 0.0004427343 }
  0x51   : > { %v257_v23 = vmul.f32 %v425_v14, %v256_v19 }
  0x59   : > { %v427_v24 = vpop.eup %426 }
  0x5a   : > { %v254_v26 = vmul.f32 0.6931472, %v427_v24 }
  0x5c   : > { %v260_v27 = vsel %vm259_vm1, %v257_v23, %v254_v26 }
  0x5d   : > { %v261_v28 = vadd.f32 %v260_v27, %v247_v25 }
  0x5f   : > { %v262_v29 = vsel %vm606_vm0, %v261_v28, 0.0 }
  0x60   : > { %266 = vst [vmem:[%s222_s26] sm:$0xff] %v262_v29 }
  0x61 PF: > { %s17_s18 = sadd.s32 1, %s505_s18   ;;  %s649_s14 = smov %s493_s15 }
  0x62   : > { %p14_p10 = scmp.ge.s32.totalorder %s17_s18, 4   ;;  %s625_s15 = smov 0  }
  0x63   : > { %s650_s16 = smov %s501_s17  ;;  %s651_s17 = smov %s653_s19 }
  0x64   :  { %16 = sbr.rel (!%p14_p10) target bundleno = 6 (0x6), region = 75 }
  0x6b   :  { %286 = vsyncpa [#allocation5], 1 }
  0x6c   :  { %288 = vsyncpa [#allocation5 + $0x1], 1 }

</bundles_post_ra>
